<compile_context>
chip_gen: v5e
topology: v5e:2x2
jax: 0.10.0
libtpu: 0.0.40
codegen_flags: <defaults>
</compile_context>

<pallas_src>
import jax
import jax.numpy as jnp
from jax import lax
from jax.experimental import pallas as pl
from jax.experimental.pallas import tpu as pltpu

EPS = 1e-5
_LANE = 128
# Conservative, generation-safe limits: fine on v5e/v6e (128 MiB physical) and
# v7x (64 MiB physical, 32 MiB default scoped).
_VMEM_LIMIT_BYTES = 48 * 1024 * 1024   # raised scoped-VMEM limit
_TILE_BUDGET_BYTES = 24 * 1024 * 1024  # target for the double-buffered tile set


def _round_up(x, m):
    return ((x + m - 1) // m) * m


def _make_adain_kernel(hw_c: int, hw_s: int):
    """Kernel closure over the *unpadded* spatial sizes (static Python ints)."""
    inv_nc = 1.0 / hw_c
    inv_ns = 1.0 / hw_s
    # Unbiased variance (torch.var default). Guard HW == 1 (torch yields NaN
    # there; we return var = 0 -> std = sqrt(eps)).
    dof_c = 1.0 / max(hw_c - 1, 1)
    dof_s = 1.0 / max(hw_s - 1, 1)

    def kernel(xc_ref, xs_ref, o_ref):
        xc = xc_ref[...].astype(jnp.float32)
        xs = xs_ref[...].astype(jnp.float32)

        # Row-wise sum / sum-of-squares (XLU cross-lane reduces). Zero lane
        # padding contributes nothing, so padded tiles need no masks.
        c_sum = jnp.sum(xc, axis=-1, keepdims=True)
        c_sq = jnp.sum(xc * xc, axis=-1, keepdims=True)
        c_mean = c_sum * inv_nc
        c_var = jnp.maximum((c_sq - hw_c * c_mean * c_mean) * dof_c, 0.0)

        s_sum = jnp.sum(xs, axis=-1, keepdims=True)
        s_sq = jnp.sum(xs * xs, axis=-1, keepdims=True)
        s_mean = s_sum * inv_ns
        s_var = jnp.maximum((s_sq - hw_s * s_mean * s_mean) * dof_s, 0.0)
        s_std = jnp.sqrt(s_var + EPS)

        # Fused per-row affine: out = xc * scale + shift (one FMA on the slab).
        scale = s_std * lax.rsqrt(c_var + EPS)     # rsqrt -> EUP slot (free)
        shift = s_mean - c_mean * scale
        o_ref[...] = (xc * scale + shift).astype(o_ref.dtype)

    return kernel


def adaptive_instance_normalization(x_cont, x_style=None):
    """AdaIN forward. x_cont: (N, C, Hc, Wc); x_style: (N, C, Hs, Ws) or None."""
    if x_style is None:
        return x_cont

    assert x_cont.ndim == 4 and x_style.ndim == 4
    assert x_cont.shape[:2] == x_style.shape[:2]

    N, C, H, W = x_cont.shape
    NC = N * C
    HWc = H * W
    HWs = x_style.shape[2] * x_style.shape[3]

    xc2 = x_cont.reshape(NC, HWc)
    xs2 = x_style.reshape(NC, HWs)

    # ---- lane-dense padding: last dim -> multiple of 128 (zero padding is
    # exact for sum / sum-of-squares statistics; output stores stay unmasked).
    hwc_pad = _round_up(max(HWc, _LANE), _LANE)
    hws_pad = _round_up(max(HWs, _LANE), _LANE)
    if hwc_pad != HWc:
        xc2 = jnp.pad(xc2, ((0, 0), (0, hwc_pad - HWc)))
    if hws_pad != HWs:
        xs2 = jnp.pad(xs2, ((0, 0), (0, hws_pad - HWs)))

    # ---- row-tile (TR) selection: biggest sublane-aligned tile whose
    # double-buffered working set (xc in + xs in + out) plus f32 temporaries
    # fits the budget.
    itemsize = jnp.dtype(x_cont.dtype).itemsize
    sublane = max(8, 32 // itemsize)                  # 8 for f32, 16 for bf16
    io_bytes_per_row = 2 * (2 * hwc_pad + hws_pad) * itemsize        # 2x buffers
    f32_tmp_per_row = (hwc_pad + hws_pad) * 4 if itemsize < 4 else 0  # casts
    bytes_per_row = io_bytes_per_row + f32_tmp_per_row
    tr = max(sublane, (_TILE_BUDGET_BYTES // bytes_per_row) // sublane * sublane)
    # TODO(synk): for extremely large H*W (one 8-row tile alone exceeds the VMEM
    # budget), split H*W across a second "arbitrary" grid axis with scratch
    # stat accumulation + a second apply pass; not needed for typical
    # feature-map sizes.

    nc_al = _round_up(NC, sublane)
    tr = min(tr, nc_al)
    # Keep >= 2 grid steps when possible so both v7x TensorCores get work.
    if tr >= nc_al and nc_al >= 2 * sublane:
        tr = max(sublane, (nc_al // 2) // sublane * sublane)

    grid_rows = pl.cdiv(NC, tr)
    nc_pad = grid_rows * tr
    if nc_pad != NC:
        xc2 = jnp.pad(xc2, ((0, nc_pad - NC), (0, 0)))
        xs2 = jnp.pad(xs2, ((0, nc_pad - NC), (0, 0)))

    kernel = _make_adain_kernel(HWc, HWs)

    out2 = pl.pallas_call(
        kernel,
        out_shape=jax.ShapeDtypeStruct((nc_pad, hwc_pad), x_cont.dtype),
        grid_spec=pltpu.PrefetchScalarGridSpec(
            num_scalar_prefetch=0,
            grid=(grid_rows,),
            in_specs=[
                pl.BlockSpec((tr, hwc_pad), lambda i: (i, 0)),
                pl.BlockSpec((tr, hws_pad), lambda i: (i, 0)),
            ],
            out_specs=pl.BlockSpec((tr, hwc_pad), lambda i: (i, 0)),
        ),
        compiler_params=pltpu.CompilerParams(
            dimension_semantics=("parallel",),
            vmem_limit_bytes=_VMEM_LIMIT_BYTES,
        ),
    )(xc2, xs2)

    return out2[:NC, :HWc].reshape(N, C, H, W)


def _reference_adain(x_cont, x_style, eps=1e-5):
    # pure-JAX reference mirroring the PyTorch code (unbiased var, own HW each)
    N, C = x_cont.shape[:2]
    xc = x_cont.reshape(N, C, -1).astype(jnp.float32)
    xs = x_style.reshape(N, C, -1).astype(jnp.float32)
    c_mean = xc.mean(-1)[:, :, None, None]
    c_std = jnp.sqrt(jnp.var(xc, axis=-1, ddof=1) + eps)[:, :, None, None]
    s_mean = xs.mean(-1)[:, :, None, None]
    s_std = jnp.sqrt(jnp.var(xs, axis=-1, ddof=1) + eps)[:, :, None, None]
    return ((x_cont - c_mean) / c_std * s_std + s_mean).astype(x_cont.dtype)


if __name__ == "__main__":
    key = jax.random.PRNGKey(0)
    k1, k2, k3, k4 = jax.random.split(key, 4)

    # Primary shape: lane-aligned spatial, NC multiple of 8.
    x_cont = jax.random.normal(k1, (2, 4, 16, 16), dtype=jnp.float32)
    x_style = jax.random.normal(k2, (2, 4, 16, 16), dtype=jnp.float32) * 2.0 + 0.5
    out = jax.block_until_ready(adaptive_instance_normalization(x_cont, x_style))
    ref = _reference_adain(x_cont, x_style)
    assert out.shape == x_cont.shape
    assert jnp.allclose(out, ref, atol=1e-4, rtol=1e-4), "mismatch vs reference"

    # Ragged shape: NC % 8 != 0, HW not a lane multiple, style spatial size
    # differs from content (only N, C must match — like the PyTorch module).
    xc_odd = jax.random.normal(k3, (2, 3, 7, 9), dtype=jnp.float32)
    xs_odd = jax.random.normal(k4, (2, 3, 5, 5), dtype=jnp.float32) * 0.7 - 1.0
    out_odd = jax.block_until_ready(adaptive_instance_normalization(xc_odd, xs_odd))
    ref_odd = _reference_adain(xc_odd, xs_odd)
    assert out_odd.shape == xc_odd.shape
    assert jnp.allclose(out_odd, ref_odd, atol=1e-4, rtol=1e-4), "ragged mismatch"

    # bf16 inputs exercise the f32-intermediate path and bf16 sublane packing.
    xc_bf = x_cont.astype(jnp.bfloat16)
    xs_bf = x_style.astype(jnp.bfloat16)
    out_bf = jax.block_until_ready(adaptive_instance_normalization(xc_bf, xs_bf))
    ref_bf = _reference_adain(xc_bf, xs_bf)
    assert out_bf.dtype == jnp.bfloat16 and out_bf.shape == xc_bf.shape
    assert jnp.allclose(out_bf.astype(jnp.float32), ref_bf.astype(jnp.float32),
                        atol=3e-2, rtol=3e-2), "bf16 mismatch"

    # x_style=None path returns content unchanged.
    passthrough = adaptive_instance_normalization(x_cont, None)
    assert jnp.array_equal(passthrough, x_cont)

    print("KERNEL_OK")
</pallas_src>

<mosaic_0001>
module attributes {stable_mosaic.version = 11 : i64} {
  func.func @kernel(%arg0: i32, %arg1: memref<8x256xf32, #tpu.memory_space<vmem>>, %arg2: memref<8x256xf32, #tpu.memory_space<vmem>>, %arg3: memref<8x256xf32, #tpu.memory_space<vmem>>) attributes {dimension_semantics = [#tpu.dimension_semantics<parallel>], iteration_bounds = array<i64: 1>, scalar_prefetch = 0 : i64, scratch_operands = 0 : i64, tpu.core_type = #tpu.core_type<tc>, window_params = [{transform_indices = @transform_0, window_bounds = array<i64: 8, 256>}, {transform_indices = @transform_1, window_bounds = array<i64: 8, 256>}, {transform_indices = @transform_2, window_bounds = array<i64: 8, 256>}]} {
    %c0 = arith.constant 0 : index
    %c0_0 = arith.constant 0 : index
    %0 = vector.load %arg1[%c0, %c0_0] : memref<8x256xf32, #tpu.memory_space<vmem>>, vector<8x256xf32>
    %c0_1 = arith.constant 0 : index
    %c0_2 = arith.constant 0 : index
    %1 = vector.load %arg2[%c0_1, %c0_2] : memref<8x256xf32, #tpu.memory_space<vmem>>, vector<8x256xf32>
    %cst = arith.constant dense<0.000000e+00> : vector<8xf32>
    %2 = vector.multi_reduction <add>, %0, %cst [1] : vector<8x256xf32> to vector<8xf32>
    %3 = vector.shape_cast %2 : vector<8xf32> to vector<8x1xf32>
    %4 = arith.mulf %0, %0 : vector<8x256xf32>
    %cst_3 = arith.constant dense<0.000000e+00> : vector<8xf32>
    %5 = vector.multi_reduction <add>, %4, %cst_3 [1] : vector<8x256xf32> to vector<8xf32>
    %6 = vector.shape_cast %5 : vector<8xf32> to vector<8x1xf32>
    %cst_4 = arith.constant 3.906250e-03 : f32
    %7 = vector.broadcast %cst_4 : f32 to vector<8x1xf32>
    %8 = arith.mulf %3, %7 : vector<8x1xf32>
    %cst_5 = arith.constant 2.560000e+02 : f32
    %9 = vector.broadcast %cst_5 : f32 to vector<8x1xf32>
    %10 = arith.mulf %9, %8 : vector<8x1xf32>
    %11 = arith.mulf %10, %8 : vector<8x1xf32>
    %12 = arith.subf %6, %11 : vector<8x1xf32>
    %cst_6 = arith.constant 0.00392156886 : f32
    %13 = vector.broadcast %cst_6 : f32 to vector<8x1xf32>
    %14 = arith.mulf %12, %13 : vector<8x1xf32>
    %cst_7 = arith.constant 0.000000e+00 : f32
    %15 = vector.broadcast %cst_7 : f32 to vector<8x1xf32>
    %16 = arith.maximumf %14, %15 : vector<8x1xf32>
    %cst_8 = arith.constant dense<0.000000e+00> : vector<8xf32>
    %17 = vector.multi_reduction <add>, %1, %cst_8 [1] : vector<8x256xf32> to vector<8xf32>
    %18 = vector.shape_cast %17 : vector<8xf32> to vector<8x1xf32>
    %19 = arith.mulf %1, %1 : vector<8x256xf32>
    %cst_9 = arith.constant dense<0.000000e+00> : vector<8xf32>
    %20 = vector.multi_reduction <add>, %19, %cst_9 [1] : vector<8x256xf32> to vector<8xf32>
    %21 = vector.shape_cast %20 : vector<8xf32> to vector<8x1xf32>
    %cst_10 = arith.constant 3.906250e-03 : f32
    %22 = vector.broadcast %cst_10 : f32 to vector<8x1xf32>
    %23 = arith.mulf %18, %22 : vector<8x1xf32>
    %cst_11 = arith.constant 2.560000e+02 : f32
    %24 = vector.broadcast %cst_11 : f32 to vector<8x1xf32>
    %25 = arith.mulf %24, %23 : vector<8x1xf32>
    %26 = arith.mulf %25, %23 : vector<8x1xf32>
    %27 = arith.subf %21, %26 : vector<8x1xf32>
    %cst_12 = arith.constant 0.00392156886 : f32
    %28 = vector.broadcast %cst_12 : f32 to vector<8x1xf32>
    %29 = arith.mulf %27, %28 : vector<8x1xf32>
    %cst_13 = arith.constant 0.000000e+00 : f32
    %30 = vector.broadcast %cst_13 : f32 to vector<8x1xf32>
    %31 = arith.maximumf %29, %30 : vector<8x1xf32>
    %cst_14 = arith.constant 9.99999974E-6 : f32
    %32 = vector.broadcast %cst_14 : f32 to vector<8x1xf32>
    %33 = arith.addf %31, %32 : vector<8x1xf32>
    %34 = math.sqrt %33 : vector<8x1xf32>
    %cst_15 = arith.constant 9.99999974E-6 : f32
    %35 = vector.broadcast %cst_15 : f32 to vector<8x1xf32>
    %36 = arith.addf %16, %35 : vector<8x1xf32>
    %37 = math.rsqrt %36 : vector<8x1xf32>
    %38 = arith.mulf %34, %37 : vector<8x1xf32>
    %39 = arith.mulf %8, %38 : vector<8x1xf32>
    %40 = arith.subf %23, %39 : vector<8x1xf32>
    %41 = vector.broadcast %38 : vector<8x1xf32> to vector<8x256xf32>
    %42 = arith.mulf %0, %41 : vector<8x256xf32>
    %43 = vector.broadcast %40 : vector<8x1xf32> to vector<8x256xf32>
    %44 = arith.addf %42, %43 : vector<8x256xf32>
    %c0_16 = arith.constant 0 : index
    %c0_17 = arith.constant 0 : index
    %45 = vector.load %arg3[%c0_16, %c0_17] : memref<8x256xf32, #tpu.memory_space<vmem>>, vector<8x256xf32>
    tpu.vector_store %arg3[%c0_16, %c0_17], %44 {strides = array<i32>} : memref<8x256xf32, #tpu.memory_space<vmem>>, vector<8x256xf32>,
    return
  }
  func.func @transform_0(%arg0: i32) -> (i32, i32) {
    %c0_i32 = arith.constant 0 : i32
    %c0_i32_0 = arith.constant 0 : i32
    return %arg0, %c0_i32 : i32, i32
  }
  func.func @transform_1(%arg0: i32) -> (i32, i32) {
    %c0_i32 = arith.constant 0 : i32
    %c0_i32_0 = arith.constant 0 : i32
    return %arg0, %c0_i32 : i32, i32
  }
  func.func @transform_2(%arg0: i32) -> (i32, i32) {
    %c0_i32 = arith.constant 0 : i32
    %c0_i32_0 = arith.constant 0 : i32
    return %arg0, %c0_i32 : i32, i32
  }
}

</mosaic_0001>

<bundles_post_ra>
// kernel: tpu_custom_call.1
= control target key start
LH: loop header
LB: loop body
LE: loop exit
PB: predicated region body
PF: predicated region fallthrough
CT: control target
= control target key end

     0   :  { %7 = vsyncpa [#allocation3], 0  ;;  %s235_s0 = inlined_call_operand.hbm [shape: f32[8,256], index: 0, kind: input, shape index: {}]   ;;  %s236_s1 = inlined_call_operand.hbm [shape: f32[8,256], index: 1, kind: input, shape index: {}]   ;;  %s237_s2 = inlined_call_operand.hbm [shape: f32[8,256], index: 2, kind: output, shape index: {}]  }
   0x1   :  { %8 = vsyncpa [#allocation6], 0 }
   0x2   :  { %9 = vsyncpa [#allocation4], 0  ;;  %s15_s11 = sshll.u32 %s235_s0, 4  ;;  %s208_s12 = smov [#allocation2]   ;;  %s16_s11 = int_to_ptr.hbm [resolvable:$true] %s15_s11 }
   0x3   :  { %s17_s13 = sshll.u32 %s208_s12, 4  ;;  %s26_s16 = sshll.u32 %s236_s1, 4  ;;  %s18_s13 = int_to_ptr.vmem [resolvable:$true] %s17_s13  ;;  %s27_s16 = int_to_ptr.hbm [resolvable:$true] %s26_s16 }
   0x4   :  { %20 = dma.hbm_to_vmem [thread:$0]  %s16_s11, 256, %s18_s13, [#allocation3]  }
   0x5   :  { %s209_s17 = smov [#allocation5]  }
   0x6   :  { %s28_s18 = sshll.u32 %s209_s17, 4  ;;  %s29_s18 = int_to_ptr.vmem [resolvable:$true] %s28_s18 }
   0x7   :  { %31 = dma.hbm_to_vmem [thread:$0]  %s27_s16, 256, %s29_s18, [#allocation6]  }
   0x8   :  { %202 = dma.done.wait [#allocation3], 256  }
   0x9   :  { %203 = vsyncadd [#allocation3], 4294967040 }
   0xa   :  { %204 = dma.done.wait [#allocation6], 256  }
   0xb   :  { %205 = vsyncadd [#allocation6], 4294967040  ;;  %v42_v0 = vld [vmem:[#allocation5] sm:$0xff]  ;;  %v43_v1 = vld [vmem:[#allocation5 + $0x8] sm:$0xff]  ;;  %s210_s0 = smov [#allocation7]   ;;  %s112_s21 = sshll.u32 %s237_s2, 4  ;;  %s113_s21 = int_to_ptr.hbm [resolvable:$true] %s112_s21 }
   0xc   :  { %v58_v2 = vadd.f32 %v43_v1, %v42_v0  ;;  %v61_v3 = vmul.f32 %v42_v0, %v42_v0  ;;  %v62_v4 = vmul.f32 %v43_v1, %v43_v1  ;;  %v40_v6 = vld [vmem:[#allocation2] sm:$0xff]  ;;  %v41_v7 = vld [vmem:[#allocation2 + $0x8] sm:$0xff]  ;;  %s110_s1 = sshll.u32 %s210_s0, 4  ;;  %s111_s1 = int_to_ptr.vmem [resolvable:$true] %s110_s1 }
   0xd   :  { %v47_v8 = vmul.f32 %v40_v6, %v40_v6  ;;  %v48_v9 = vmul.f32 %v41_v7, %v41_v7  ;;  %v44_v10 = vadd.f32 %v41_v7, %v40_v6 }
   0xe   :  { %59 = vadd.xlane.f32.xlu0 %v58_v2  ;;  %v63_v5 = vadd.f32 %v62_v4, %v61_v3 }
   0xf   :  { %v49_v11 = vadd.f32 %v48_v9, %v47_v8 }
  0x10   :  { %64 = vadd.xlane.f32.xlu1 %v63_v5 }
  0x16   :  { %45 = vadd.xlane.f32.xlu0 %v44_v10 }
  0x18   :  { %50 = vadd.xlane.f32.xlu1 %v49_v11 }
  0x81   :  { %v60_v12 = vpop.xlane.xlu0 %59 }
  0x82   :  { %v66_v13 = vmul.f32 0.00390625, %v60_v12 }
  0x83   :  { %v65_v14 = vpop.xlane.xlu1 %64 }
  0x84   :  { %v67_v15 = vmul.f32 256.0, %v66_v13 }
  0x86   :  { %v68_v16 = vmul.f32 %v67_v15, %v66_v13 }
  0x88   :  { %v69_v17 = vsub.f32 %v65_v14, %v68_v16 }
  0x89   :  { %v46_v18 = vpop.xlane.xlu0 %45 }
  0x8a   :  { %v70_v19 = vmul.f32 0.003921569, %v69_v17  ;;  %v52_v20 = vmul.f32 0.00390625, %v46_v18 }
  0x8b   :  { %v51_v24 = vpop.xlane.xlu1 %50 }
  0x8c   :  { %v71_v21 = vmax.f32 %v70_v19, 0.0  ;;  %v53_v22 = vmul.f32 256.0, %v52_v20 }
  0x8e   :  { %v72_v23 = vadd.f32 1e-05, %v71_v21  ;;  %v54_v25 = vmul.f32 %v53_v22, %v52_v20 }
  0x90   :  { %126 = vrsqrt.f32 %v72_v23  ;;  %v55_v26 = vsub.f32 %v51_v24, %v54_v25  ;;  %vm80_vm0 = vcmp.eq.f32.partialorder %v72_v23, inf  ;;  %v83_v43 = vand.u32 2147483648, %v72_v23 }
  0x91   :  { %vm82_vm3 = vcmp.eq.f32.partialorder %v72_v23, 0.0 }
  0x92   :  { %v56_v27 = vmul.f32 0.003921569, %v55_v26 }
  0x94   :  { %v57_v28 = vmax.f32 %v56_v27, 0.0 }
  0x96   :  { %v127_v29 = vpop.eup %126  ;;  %v85_v31 = vadd.f32 1e-05, %v57_v28 }
  0x97   :  { %v74_v30 = vmul.f32 %v127_v29, %v72_v23 }
  0x98   :  { %128 = vrsqrt.f32 %v85_v31  ;;  %vm92_vm2 = vweird.f32 %v85_v31 }
  0x99   :  { %v75_v32 = vmul.f32 %v127_v29, %v74_v30 }
  0x9b   :  { %v76_v33 = vmul.f32 0.5, %v75_v32 }
  0x9d   :  { %v77_v34 = vsub.f32 1.5, %v76_v33 }
  0x9e   :  { %v129_v35 = vpop.eup %128 }
  0x9f   :  { %v78_v36 = vmul.f32 %v127_v29, %v77_v34  ;;  %v87_v37 = vmul.f32 %v129_v35, %v85_v31  ;;  %vm93_vm1 = vweird.f32 %v129_v35 }
  0xa0   :  { %vm94_vm4 = vmor %vm92_vm2, %vm93_vm1 }
  0xa1   :  { %v88_v38 = vmul.f32 %v129_v35, %v87_v37  ;;  %v79_v39 = vmul.f32 %v78_v36, %v72_v23 }
  0xa3   :  { %v89_v40 = vmul.f32 0.5, %v88_v38  ;;  %v81_v42 = vsel %vm80_vm0, %v72_v23, %v79_v39 }
  0xa4   :  { %v84_v45 = vsel %vm82_vm3, %v83_v43, %v81_v42 }
  0xa5   :  { %v90_v41 = vsub.f32 1.5, %v89_v40 }
  0xa7   :  { %v91_v44 = vmul.f32 %v129_v35, %v90_v41 }
  0xa9   :  { %v95_v46 = vsel %vm94_vm4, %v129_v35, %v91_v44 }
  0xaa   :  { %v96_v47 = vmul.f32 %v95_v46, %v84_v45 }
  0xac   :  { %v97_v48 = vmul.f32 %v96_v47, %v52_v20  ;;  %v99_v50 = vmul.f32 %v96_v47, %v40_v6  ;;  %v100_v51 = vmul.f32 %v96_v47, %v41_v7 }
  0xae   :  { %v98_v49 = vsub.f32 %v66_v13, %v97_v48 }
  0xb0   :  { %v101_v52 = vadd.f32 %v99_v50, %v98_v49  ;;  %v102_v53 = vadd.f32 %v100_v51, %v98_v49 }
  0xb2   :  { %103 = vst [vmem:[#allocation7] sm:$0xff] %v101_v52 }
  0xb3   :  { %104 = vst [vmem:[#allocation7 + $0x8] sm:$0xff] %v102_v53 }
  0xb4   :  { %115 = dma.vmem_to_hbm [thread:$0]  %s111_s1, 256, %s113_s21, [#allocation4]  }
  0xb5   :  { %206 = dma.done.wait [#allocation4], 256  }
  0xb6   :  { %207 = vsyncadd [#allocation4], 4294967040 }
  0xb7   :  { %120 = vsyncpa [#allocation3], 1 }
  0xb8   :  { %121 = vsyncpa [#allocation6], 1 }
  0xb9   :  { %122 = vsyncpa [#allocation4], 1 }

</bundles_post_ra>
